<compile_context>
chip_gen: v7x
topology: tpu7x:2x2x1
jax: 0.10.0
libtpu: 0.0.40
codegen_flags: <defaults>
</compile_context>

<pallas_src>
import functools
import math

import jax
import jax.numpy as jnp
from jax.experimental import pallas as pl
from jax.experimental.pallas import tpu as pltpu


# ------------------------- Pallas kernel -------------------------

def _matmul_relu_pool_kernel(p_ref, w_ref, b_ref, o_ref):
    # p_ref: (1, TP, KC)      im2col patches for this tile (KC = 7*Cin)
    # w_ref: (KC, 2*Cout)     folded conv weight: [even-row taps | odd-row taps]
    # b_ref: (1, Cout)        conv bias
    # o_ref: (1, TP, Cout)    pooled output rows for this tile
    cout = o_ref.shape[2]
    # One MXU contraction produces both conv rows of every pool pair.
    y2 = jnp.dot(p_ref[0], w_ref[...], preferred_element_type=jnp.float32)
    # MaxPool1d(2,2): elementwise max of the two 128-aligned lane halves.
    y = jnp.maximum(y2[:, :cout], y2[:, cout:])
    # Bias + ReLU (bias-after-max is exact; see header).
    o_ref[0] = jnp.maximum(y + b_ref[...], 0.0).astype(o_ref.dtype)


# ------------------------- wrapper -------------------------

def conv_feature_extractor5(x, w, b, *, stride=2, padding=2,
                            tile_pool_rows=256, compute_dtype=jnp.float32):
    """x: (B, T, Cin); w: (Cout, Cin, K); b: (Cout,). Returns (B, L_pool, Cout) f32."""
    B, T, Cin = x.shape
    Cout, Cin_w, K = w.shape
    assert Cin_w == Cin
    assert stride == 2, "this fused kernel assumes conv stride 2 (as in the module)"

    pool = 2                                   # MaxPool1d(kernel=2, stride=2)
    L_conv = (T + 2 * padding - K) // stride + 1
    L_pool = L_conv // pool
    assert L_pool >= 1, "input too short"

    def rup(a, m):
        return ((a + m - 1) // m) * m

    # Pooled rows per grid step: multiple of 8 (unmasked output vst), capped by
    # tile_pool_rows, and small enough that B * n_tiles >= ~8 so the software
    # pipeline (and v7x's two TensorCores) have work to overlap.
    target_tiles = max(1, pl.cdiv(8, B))
    TP = min(tile_pool_rows, max(8, rup(pl.cdiv(L_pool, target_tiles), 8)))
    TP = rup(TP, 8)
    n_tiles = pl.cdiv(L_pool, TP)
    L_pool_pad = n_tiles * TP

    W_win = K + stride                         # padded positions per pooled row (=7)
    step = pool * stride                       # padded-position step between pooled rows (=4)
    KC = W_win * Cin

    # Zero-pad the (already channel-last) input; zeros beyond torch's padded
    # range are only read by the discarded rows >= L_pool.
    T_need = step * L_pool_pad + (W_win - step)
    right_pad = max(0, T_need - padding - T)
    xp = jnp.pad(x, ((0, 0), (padding, right_pad), (0, 0)))

    # im2col per pooled row: patches[:, j, t*Cin:(t+1)*Cin] = xp[:, step*j + t, :]
    taps = [xp[:, t: t + step * L_pool_pad: step, :] for t in range(W_win)]
    patches = jnp.stack(taps, axis=2).reshape(B, L_pool_pad, KC).astype(compute_dtype)

    # Fold the conv weight: left Cout columns -> even conv row of the pool
    # pair (taps at offsets 0..K-1), right Cout columns -> odd row (offsets
    # stride..stride+K-1), zeros elsewhere.
    w_t = jnp.transpose(w, (2, 1, 0))                          # (K, Cin, Cout)
    zpad = jnp.zeros((stride, Cin, Cout), w.dtype)
    w_even = jnp.concatenate([w_t, zpad], axis=0).reshape(KC, Cout)
    w_odd = jnp.concatenate([zpad, w_t], axis=0).reshape(KC, Cout)
    w_big = jnp.concatenate([w_even, w_odd], axis=1).astype(compute_dtype)  # (KC, 2*Cout)
    b2 = b.reshape(1, Cout).astype(jnp.float32)

    out = pl.pallas_call(
        _matmul_relu_pool_kernel,
        out_shape=jax.ShapeDtypeStruct((B, L_pool_pad, Cout), jnp.float32),
        grid_spec=pl.GridSpec(
            grid=(B, n_tiles),
            in_specs=[
                # Patch rows for this (batch, time-tile).
                pl.BlockSpec((1, TP, KC), lambda bi, ti: (bi, ti, 0)),
                # Folded weight / bias stay resident in VMEM (constant maps).
                pl.BlockSpec((KC, 2 * Cout), lambda bi, ti: (0, 0)),
                pl.BlockSpec((1, Cout), lambda bi, ti: (0, 0)),
            ],
            out_specs=pl.BlockSpec((1, TP, Cout), lambda bi, ti: (bi, ti, 0)),
        ),
        compiler_params=pltpu.CompilerParams(
            dimension_semantics=("parallel", "parallel")),
    )(patches, w_big, b2)

    return out[:, :L_pool, :]


# ------------------------- pure-JAX reference -------------------------

def _reference(x, w, b, *, stride=2, padding=2):
    x_ncw = jnp.transpose(x, (0, 2, 1))                              # (B, Cin, T)
    y = jax.lax.conv_general_dilated(
        x_ncw, w, window_strides=(stride,), padding=[(padding, padding)],
        dimension_numbers=("NCH", "OIH", "NCH"))                     # (B, Cout, L_conv)
    y = jax.nn.relu(y + b[None, :, None])
    B, Cout, L_conv = y.shape
    L_pool = L_conv // 2
    y = jnp.max(y[:, :, : L_pool * 2].reshape(B, Cout, L_pool, 2), axis=-1)
    return jnp.transpose(y, (0, 2, 1))                               # (B, L_pool, Cout)


# ------------------------- main -------------------------

def _run_check(key, B, T, input_dim, num_filters, K, stride, padding, tile_pool_rows):
    Cout = num_filters * 4
    kx, kw, kb = jax.random.split(key, 3)
    x = jax.random.normal(kx, (B, T, input_dim), dtype=jnp.float32)
    fan_in = input_dim * K
    bound = 1.0 / math.sqrt(fan_in)
    w = jax.random.uniform(kw, (Cout, input_dim, K), minval=-bound, maxval=bound,
                           dtype=jnp.float32)
    b = jax.random.uniform(kb, (Cout,), minval=-bound, maxval=bound,
                           dtype=jnp.float32)

    out = conv_feature_extractor5(x, w, b, stride=stride, padding=padding,
                                  tile_pool_rows=tile_pool_rows)
    out = jax.block_until_ready(out)

    ref = _reference(x, w, b, stride=stride, padding=padding)
    assert out.shape == ref.shape, (out.shape, ref.shape)
    assert jnp.allclose(out, ref, atol=1e-5, rtol=1e-5), "mismatch vs reference"


if __name__ == "__main__":
    key = jax.random.PRNGKey(0)
    k1, k2 = jax.random.split(key)

    # Small shapes implied by the module (single time tile per batch element).
    _run_check(k1, B=2, T=16, input_dim=4, num_filters=64, K=5, stride=2,
               padding=2, tile_pool_rows=256)

    # Longer sequence exercising the time-tiled grid (grid = (2, 4)).
    _run_check(k2, B=2, T=600, input_dim=4, num_filters=64, K=5, stride=2,
               padding=2, tile_pool_rows=256)

    print("KERNEL_OK")
</pallas_src>

<mosaic_0001>
module attributes {stable_mosaic.version = 11 : i64} {
  func.func @_matmul_relu_pool_kernel(%arg0: i32, %arg1: i32, %arg2: memref<1x8x28xf32, #tpu.memory_space<vmem>>, %arg3: memref<28x512xf32, #tpu.memory_space<vmem>>, %arg4: memref<1x256xf32, #tpu.memory_space<vmem>>, %arg5: memref<1x8x256xf32, #tpu.memory_space<vmem>>) attributes {dimension_semantics = [#tpu.dimension_semantics<parallel>, #tpu.dimension_semantics<parallel>], iteration_bounds = array<i64: 2, 1>, scalar_prefetch = 0 : i64, scratch_operands = 0 : i64, tpu.core_type = #tpu.core_type<tc>, window_params = [{transform_indices = @transform_0, window_bounds = array<i64: 1, 8, 28>}, {pipeline_mode = #tpu.pipeline_mode<synchronous>, transform_indices = @transform_1, window_bounds = array<i64: 28, 512>}, {pipeline_mode = #tpu.pipeline_mode<synchronous>, transform_indices = @transform_2, window_bounds = array<i64: 1, 256>}, {transform_indices = @transform_3, window_bounds = array<i64: 1, 8, 256>}]} {
    %c0 = arith.constant 0 : index
    %c0_0 = arith.constant 0 : index
    %c0_1 = arith.constant 0 : index
    %0 = vector.load %arg2[%c0, %c0_0, %c0_1] : memref<1x8x28xf32, #tpu.memory_space<vmem>>, vector<1x8x28xf32>
    %1 = vector.shape_cast %0 : vector<1x8x28xf32> to vector<8x28xf32>
    %c0_2 = arith.constant 0 : index
    %c0_3 = arith.constant 0 : index
    %2 = vector.load %arg3[%c0_2, %c0_3] : memref<28x512xf32, #tpu.memory_space<vmem>>, vector<28x512xf32>
    %cst = arith.constant dense<0.000000e+00> : vector<8x512xf32>
    %3 = tpu.matmul %1, %2, %cst {dimension_numbers = #tpu.dot_dimension_numbers<[1], [0], [0], [1], [0, 0, 1, 1], [], []>} : vector<8x28xf32>, vector<28x512xf32>, vector<8x512xf32> -> vector<8x512xf32>
    %4 = vector.extract_strided_slice %3 {offsets = [0, 0], sizes = [8, 256], strides = [1, 1]} : vector<8x512xf32> to vector<8x256xf32>
    %5 = vector.extract_strided_slice %3 {offsets = [0, 256], sizes = [8, 256], strides = [1, 1]} : vector<8x512xf32> to vector<8x256xf32>
    %6 = arith.maximumf %4, %5 : vector<8x256xf32>
    %c0_4 = arith.constant 0 : index
    %c0_5 = arith.constant 0 : index
    %7 = vector.load %arg4[%c0_4, %c0_5] : memref<1x256xf32, #tpu.memory_space<vmem>>, vector<1x256xf32>
    %8 = vector.broadcast %7 : vector<1x256xf32> to vector<8x256xf32>
    %9 = arith.addf %6, %8 : vector<8x256xf32>
    %cst_6 = arith.constant 0.000000e+00 : f32
    %10 = vector.broadcast %cst_6 : f32 to vector<8x256xf32>
    %11 = arith.maximumf %9, %10 : vector<8x256xf32>
    %c0_7 = arith.constant 0 : index
    %c0_8 = arith.constant 0 : index
    %c0_9 = arith.constant 0 : index
    %12 = vector.load %arg5[%c0_7, %c0_8, %c0_9] : memref<1x8x256xf32, #tpu.memory_space<vmem>>, vector<1x8x256xf32>
    %13 = vector.shape_cast %12 : vector<1x8x256xf32> to vector<8x256xf32>
    %14 = vector.shape_cast %11 : vector<8x256xf32> to vector<1x8x256xf32>
    tpu.vector_store %arg5[%c0_7, %c0_8, %c0_9], %14 {strides = array<i32>} : memref<1x8x256xf32, #tpu.memory_space<vmem>>, vector<1x8x256xf32>,
    return
  }
  func.func @transform_0(%arg0: i32, %arg1: i32) -> (i32, i32, i32) {
    %c0_i32 = arith.constant 0 : i32
    %c0_i32_0 = arith.constant 0 : i32
    return %arg0, %arg1, %c0_i32 : i32, i32, i32
  }
  func.func @transform_1(%arg0: i32, %arg1: i32) -> (i32, i32) {
    %c0_i32 = arith.constant 0 : i32
    %c0_i32_0 = arith.constant 0 : i32
    %c0_i32_1 = arith.constant 0 : i32
    return %c0_i32, %c0_i32_0 : i32, i32
  }
  func.func @transform_2(%arg0: i32, %arg1: i32) -> (i32, i32) {
    %c0_i32 = arith.constant 0 : i32
    %c0_i32_0 = arith.constant 0 : i32
    %c0_i32_1 = arith.constant 0 : i32
    return %c0_i32, %c0_i32_0 : i32, i32
  }
  func.func @transform_3(%arg0: i32, %arg1: i32) -> (i32, i32, i32) {
    %c0_i32 = arith.constant 0 : i32
    %c0_i32_0 = arith.constant 0 : i32
    return %arg0, %arg1, %c0_i32 : i32, i32, i32
  }
}

</mosaic_0001>

<bundles_post_ra>
// kernel: tpu_custom_call.1
= control target key start
LH: loop header
LB: loop body
LE: loop exit
PB: predicated region body
PF: predicated region fallthrough
CT: control target
= control target key end

     0   :  { %8 = vsyncpa [#allocation3], 0  ;;  %s1049_s0 = inlined_call_operand.hbm [shape: f32[2,8,28], index: 0, kind: input, shape index: {}]   ;;  %s1050_s1 = inlined_call_operand.hbm [shape: f32[28,512], index: 1, kind: input, shape index: {}]   ;;  %s1051_s2 = inlined_call_operand.vmem [shape: f32[1,256], index: 2, kind: input, shape index: {}]   ;;  %s1052_s3 = inlined_call_operand.hbm [shape: f32[2,8,256], index: 3, kind: output, shape index: {}]  }
   0x1   :  { %10 = vsyncpa [#allocation3 + $0x1], 0 }
   0x2   :  { %11 = vsyncpa [#allocation6], 0 }
   0x3   :  { %12 = vsyncpa [#allocation4], 0 }
   0x4   :  { %14 = vsyncpa [#allocation4 + $0x1], 0  ;;  %s816_s12 = smov 0   ;;  %s818_s13 = smov 0  }
   0x5   :  { %s820_s14 = smov 0   ;;  %s822_s15 = smov 0  }
   0x6   :  { %s824_s16 = smov 0   ;;  %s826_s17 = smov 0  }
   0x7 LB: > { %s523_s18 = sadd.s32 4294967295, %s787_s17   ;;  %s524_s19 = sadd.s32 4294967294, %s787_s17   ;;  %s787_s17 = sphi %s826_s17, %s20_s17   ;;  %s783_s16 = sphi %s824_s16, %s1078_s16   ;;  %s779_s15 = sphi %s822_s15, %s1077_s15   ;;  %s775_s14 = sphi %s820_s14, %s1076_s14   ;;  %s771_s13 = sphi %s818_s13, %s1075_s13   ;;  %s767_s12 = sphi %s816_s12, %s1074_s12  }
   0x8   : > { %p54_p0 = scmp.ne.s32.totalorder %s771_s13, %s767_s12  ;;  %p850_p1 = scmp.eq.s32.totalorder %s523_s18, 0 }
   0x9   : > { %p854_p2 = scmp.eq.s32.totalorder %s523_s18, 1  ;;  %p128_p3 = scmp.eq.s32.totalorder %s524_s19, 1 }
   0xa   : > { %s1057_s20 = scalar_select %p850_p1, 1, 0 }
   0xb   : > { %s1058_s21 = scalar_select %p854_p2, 1, 0 }
   0xc   : > { %p860_p4 = por %p850_p1, %p54_p0  ;;  %p525_p5 = scmp.ge.s32.totalorder %s787_s17, 1 }
   0xd   : > { %p865_p6 = por %p128_p3, %p54_p0  ;;  %p135_p7 = scmp.lt.s32.totalorder %s787_s17, 3 }
   0xe   : > { %s1059_s22 = scalar_select %p860_p4, 1, 0 }
   0xf   : > { %s1060_s23 = scalar_select %p865_p6, 1, 0 }
  0x10   : > { %p870_p8 = pnand %p525_p5, %p135_p7  ;;  %s789_s25 = smov [#allocation5]  }
  0x11   : > { %s147_s26 = sshll.u32 %s789_s25, 4  ;;  %s32_s28 = sadd.s32 1, %s783_s16  ;;  %s148_s26 = int_to_ptr.vmem [resolvable:$true] %s147_s26 }
  0x12   : > { %s1061_s24 = scalar_select %p870_p8, 1, 0 }
  0x13   : > { %p574_p9 = pneg %p870_p8  ;;  %s643_s4 = scalar_lea.hbm %s1050_s1, 2048 }
  0x14   : > { %p644_p12 = scmp.ne.s32.totalorder %s1050_s1, %s643_s4  ;;  %p650_p5 = scmp.lt.u32.totalorder %s643_s4, %s1050_s1 }
  0x15   : > { %p879_p11 = pnand %p574_p9, %p850_p1 }
  0x17   : > { %p645_p13 = pneg %p879_p11 }
  0x19   : > { %p646_p0 = pnand %p645_p13, %p644_p12 }
  0x1b   : > { %p647_p3 = pneg %p646_p0 }
  0x1d   : > { %p652_p7 = pnand %p650_p5, %p647_p3 }
  0x1f   : > { %655 = shalt.err (!%p652_p7)
}
  0x20   : > { %s656_s9 = scalar_lea.vmem %s148_s26, 2048  ;;  %p664_p1 = scmp.lt.s32.totalorder %s148_s26, %s148_s26 }
  0x21   : > { %p657_p9 = scmp.ne.s32.totalorder %s148_s26, %s656_s9  ;;  %p665_p4 = scmp.lt.s32.totalorder %s656_s9, %s656_s9 }
  0x23   : > { %p659_p10 = pnand %p657_p9, %p645_p13  ;;  %p666_p8 = por %p665_p4, %p664_p1 }
  0x25   : > { %p660_p6 = pneg %p659_p10 }
  0x27   : > { %p667_p2 = pnand %p666_p8, %p660_p6 }
  0x29   : > { %670 = shalt.err (!%p667_p2)
}
  0x2a   : > { %s790_s10 = smov 512   ;;  %s791_s11 = smov 32  }
  0x2b   : > { %577 = dma.hbm_to_vmem [thread:$0]  (!%p879_p11), %s1050_s1, 2048, %s148_s26, [#allocation6], %s790_s10, %s790_s10, %s791_s11  }
  0x2c   : > { %p34_p1 = scmp.ge.s32.totalorder %s32_s28, 2  ;;  %s41_s25 = sadd.s32 1, %s775_s14 }
  0x2d   : > { %p48_p2 = scmp.ne.s32.totalorder %s775_s14, %s771_s13  ;;  %p49_p4 = scmp.eq.s32.totalorder %s787_s17, 0 }
  0x2e   : > { %s1080_s28 = smov (%p34_p1, %s32_s28), 0  ;;  %p1064_p8 = scmp.ne.s32.totalorder %s1058_s21, 0 }
  0x2f   : > { %p906_p6 = por %p49_p4, %p48_p2  ;;  %s36_s27 = ssub.s32 %s783_s16, %s1080_s28 }
  0x30   : > { %p912_p10 = por %p1064_p8, %p48_p2  ;;  %p587_p12 = scmp.lt.s32.totalorder %s787_s17, 2 }
  0x31   : > { %p39_p11 = scmp.eq.s32.totalorder %s36_s27, 0  ;;  %s164_s26 = sand.u32 1, %s775_s14  }
  0x32   : > { %s528_s4 = sshll.u32 %s164_s26, 3  ;;  %s529_s6 = sshll.u32 %s783_s16, 7 }
  0x33   : > { %s921_s5 = scalar_select %p39_p11, %s775_s14, %s41_s25  }
  0x34   : > { %s927_s9 = scalar_lea.hbm %s1049_s0, %s529_s6  ;;  %s168_s21 = scalar_lea.vmem [#allocation2], %s528_s4 }
  0x35   : > { %s176_s10 = sshll.u32 %s168_s21, 4  ;;  %p933_p13 = pnand %p587_p12, %p906_p6  ;;  %s929_s10 = int_to_ptr.vmem [resolvable:$true] %s176_s10 }
  0x36   : > { %s165_s18 = scalar_lea.sflag [#allocation3], %s164_s26  ;;  %s671_s19 = scalar_lea.hbm %s927_s9, 128 }
  0x37   : > { %p672_p0 = scmp.ne.s32.totalorder %s927_s9, %s671_s19  ;;  %p673_p3 = pneg %p933_p13 }
  0x38   : > { %s676_s4 = scalar_lea.hbm %s1049_s0, 256  ;;  %p677_p9 = scmp.lt.u32.totalorder %s927_s9, %s1049_s0 }
  0x39   : > { %p674_p5 = pnand %p673_p3, %p672_p0  ;;  %p678_p1 = scmp.lt.u32.totalorder %s676_s4, %s671_s19 }
  0x3a   : > { %p680_p4 = scmp.lt.u32.totalorder %s671_s19, %s927_s9 }
  0x3b   : > { %p675_p7 = pneg %p674_p5  ;;  %p679_p2 = por %p678_p1, %p677_p9 }
  0x3d   : > { %p681_p6 = por %p680_p4, %p679_p2 }
  0x3f   : > { %p682_p8 = pnand %p681_p6, %p675_p7 }
  0x41   : > { %685 = shalt.err (!%p682_p8)
}
  0x42   : > { %s686_s26 = scalar_lea.vmem %s929_s10, 128  ;;  %s792_s7 = smov [#allocation2]  }
  0x43   : > { %p687_p12 = scmp.ne.s32.totalorder %s929_s10, %s686_s26  ;;  %s691_s8 = sshll.u32 %s792_s7, 4  ;;  %s692_s8 = int_to_ptr.vmem [resolvable:$false] %s691_s8 }
  0x44   : > { %s693_s21 = scalar_lea.vmem %s692_s8, 256  ;;  %p694_p5 = scmp.lt.s32.totalorder %s929_s10, %s692_s8 }
  0x45   : > { %p689_p11 = pnand %p687_p12, %p673_p3  ;;  %p695_p9 = scmp.lt.s32.totalorder %s693_s21, %s686_s26 }
  0x47   : > { %p690_p0 = pneg %p689_p11  ;;  %p696_p1 = por %p695_p9, %p694_p5 }
  0x49   : > { %p697_p2 = pnand %p696_p1, %p690_p0 }
  0x4b   : > { %700 = shalt.err (!%p697_p2)
}
  0x4c   : > { %581 = dma.hbm_to_vmem [thread:$0]  (!%p933_p13), %s927_s9, 128, %s929_s10, %s165_s18  }
  0x4d   : > { %p1067_p7 = scmp.ne.s32.totalorder %s1061_s24, 0 }
  0x4e   : > { %s965_s19 = sand.u32 (!%p1067_p7), 1, %s771_s13   ;;  %p1068_p3 = scmp.ne.s32.totalorder (!%p1067_p7), %s1059_s22, 0 }
  0x4f   : > { %185 = sbr.rel (%p1067_p7) target bundleno = 336 (0x150), region = 32  ;;  %s531_s25 = sshll.u32 (!%p1067_p7), %s965_s19, 3 }
  0x50   : > { %s188_s27 = scalar_lea.sflag (!%p1067_p7), [#allocation3], %s965_s19  ;;  %s969_s4 = scalar_lea.vmem (!%p1067_p7), [#allocation2], %s531_s25 }
  0x56   : > { %754 = dma.done.wait (%p1068_p3), %s188_s27, 128  }
  0x57   : > { %756 = vsyncadd (%p1068_p3), %s188_s27, 4294967168  ;;  %p1069_p13 = scmp.ne.s32.totalorder %s1057_s20, 0 }
  0x59   : > { %758 = dma.done.wait (%p1069_p13), [#allocation6], 2048  }
  0x5a   : > { %760 = vsyncadd (%p1069_p13), [#allocation6], 4294965248  ;;  %v793_v0 = vmov 0.0   ;;  %vm239_vm0 = vcmask 1043456   ;;  %vm794_vm1 = vmmov 1   ;;  %v220_v2 = vld [vmem:[#allocation5 + $0x8] sm:$0xff]  ;;  %v398_v27 = vlaneseq }
  0x5b   : > { %316 = vmatprep.mubr.f32.mxu0 %v793_v0  ;;  %387 = vmatprep.mubr.f32.mxu1 %v793_v0  ;;  %vm979_vm2 = vmpackc.low %vm239_vm0, %vm794_vm1  ;;  %v224_v3 = vld [vmem:[#allocation5 + $0x28] sm:$0xff]  ;;  %v222_v4 = vld [vmem:[#allocation5 + $0x18] sm:$0xff]  ;;  %vm235_vm3 = vcmask 228352   ;;  %s533_s24 = sshll.u32 %s965_s19, 4  ;;  %s545_s9 = sshll.u32 %s779_s15, 8 }
  0x5c   : > { %v546_v5 = vpack.c.bf16 %v224_v3, %v220_v2  ;;  %v226_v6 = vld [vmem:[#allocation5 + $0x38] sm:$0xff]  ;;  %v219_v7 = vld [vmem:[#allocation5] sm:$0xff]  ;;  %v221_v11 = vld [vmem:[#allocation5 + $0x10] sm:$0xff]  ;;  %v399_v28 = vshrl.u32 %v398_v27, 7  ;;  %s217_s10 = scalar_lea.vmem [#allocation7], %s533_s24  ;;  %s1000_s6 = scalar_lea.hbm %s1052_s3, %s545_s9 }
  0x5d   : > { %v223_v8 = vld [vmem:[#allocation5 + $0x20] sm:$0xff]  ;;  %v556_v9 = vpack.c.bf16 %v226_v6, %v222_v4  ;;  %v225_v12 = vld [vmem:[#allocation5 + $0x30] sm:$0xff]  ;;  %v228_v13 = vld [vmem:[#allocation5 + $0x48] sm:$0xff]  ;;  %s431_s11 = sshll.u32 %s217_s10, 4  ;;  %s415_s26 = scalar_lea.sflag [#allocation4], %s965_s19  ;;  %s1002_s11 = int_to_ptr.vmem [resolvable:$true] %s431_s11 }
  0x5e   : > { %v548_v10 = vpack.c.bf16 %v223_v8, %v219_v7  ;;  %547 = vmatprep.subr.bf16.mxu0 %v546_v5  ;;  %v558_v14 = vpack.c.bf16 %v225_v12, %v221_v11  ;;  %v232_v15 = vld [vmem:[#allocation5 + $0x68] sm:$0xf]  ;;  %v230_v16 = vld [vmem:[#allocation5 + $0x58] sm:$0xff]  ;;  %v227_v20 = vld [vmem:[#allocation5 + $0x40] sm:$0xff]  ;;  %v400_v29 = vsub.s32 0, %v399_v28  ;;  %v404_v31 = vsub.s32 1, %v399_v28 }
  0x5f   : > { %v234_v17 = vld [vmem:[#allocation5 + $0x78] sm:$0xf]  ;;  %557 = vmatprep.subr.bf16.mxu1 %v556_v9  ;;  %v550_v18 = vpack.c.bf16 %v232_v15, %v228_v13  ;;  %v231_v21 = vld [vmem:[#allocation5 + $0x60] sm:$0xf]  ;;  %v229_v22 = vld [vmem:[#allocation5 + $0x50] sm:$0xff]  ;;  %s701_s7 = scalar_lea.vmem %s1002_s11, 256 }
  0x60   : > { %549 = vmatpush1.bf16.msra.mxu0 %v548_v10  ;;  %v560_v19 = vpack.c.bf16 %v234_v17, %v230_v16  ;;  %559 = vmatpush1.bf16.msra.mxu1 %v558_v14  ;;  %v553_v23 = vpack.c.bf16 %v231_v21, %v227_v20  ;;  %v233_v24 = vld [vmem:[#allocation5 + $0x70] sm:$0xf]  ;;  %p702_p4 = scmp.ne.s32.totalorder %s1002_s11, %s701_s7  ;;  %s795_s15 = smov [#allocation7]  }
  0x61   : > { %552 = vmatprep.subr.msk.bf16.mxu0 %vm979_vm2, %v550_v18  ;;  %v563_v25 = vpack.c.bf16 %v233_v24, %v229_v22  ;;  %v218_v26 = vld [vmem:[%s969_s4] sm:$0xff]  ;;  %s705_s8 = sshll.u32 %s795_s15, 4  ;;  %s706_s8 = int_to_ptr.vmem [resolvable:$false] %s705_s8 }
  0x62   : > { %562 = vmatprep.subr.msk.bf16.mxu1 %vm979_vm2, %v560_v19  ;;  %v396_v30 = vld [vmem:[%s1051_s2] sm:$0x3]  ;;  %p703_p6 = pnand %p702_p4, %p912_p10  ;;  %s707_s21 = scalar_lea.vmem %s706_s8, 512 }
  0x63   : > { %v401_v33 = vrot.slane %v396_v30, %v400_v29  ;;  %v405_v36 = vrot.slane %v396_v30, %v404_v31  ;;  %p708_p12 = scmp.lt.s32.totalorder %s1002_s11, %s706_s8  ;;  %p709_p11 = scmp.lt.s32.totalorder %s707_s21, %s701_s7 }
  0x64   : > { %555 = vmatpush1.bf16.msk.msra.mxu0 %vm979_vm2, %v553_v23  ;;  %565 = vmatpush1.bf16.msk.msra.mxu1 %vm979_vm2, %v563_v25  ;;  %p704_p8 = pneg %p703_p6 }
  0x65   : > { %p710_p0 = por %p709_p11, %p708_p12 }
  0x67   : > { %536 = vmatmul.mubr.msk.f32.vlgmr.msra.gmra.mrb[0].mxu0 %vm235_vm3, %v218_v26  ;;  %539 = vmatmul.mubr.msk.f32.vlgmr.msra.gmra.mrb[0].mxu1 %vm235_vm3, %v218_v26  ;;  %p711_p5 = pnand %p710_p0, %p704_p8 }
 0x13a   : > { %v318_v32 = vpop.f32.mrb[0].mxu0  ;;  %v389_v34 = vpop.f32.mrb[0].mxu1 }
 0x13b   : > { %v320_v35 = vpop.f32.mrb[1].mxu0  ;;  %v394_v37 = vmax.f32 %v318_v32, %v389_v34  ;;  %v391_v38 = vpop.f32.mrb[1].mxu1 }
 0x13c   : > { %v395_v39 = vmax.f32 %v320_v35, %v391_v38 }
 0x13d   : > { %v408_v40 = vadd.f32 %v401_v33, %v394_v37 }
 0x13e   : > { %v409_v41 = vadd.f32 %v405_v36, %v395_v39 }
 0x13f   : > { %v410_v42 = vmax.f32 %v408_v40, 0.0 }
 0x140   : > { %v411_v43 = vmax.f32 %v409_v41, 0.0 }
 0x141   : > { %412 = vst [vmem:[%s217_s10] sm:$0xff] %v410_v42 }
 0x142   : > { %413 = vst [vmem:[%s217_s10 + $0x8] sm:$0xff] %v411_v43 }
 0x143   : > { %714 = shalt.err (!%p711_p5)
}
 0x144   : > { %s715_s19 = scalar_lea.hbm %s1000_s6, 256  ;;  %s719_s4 = scalar_lea.hbm %s1052_s3, 512 }
 0x145   : > { %p716_p9 = scmp.ne.s32.totalorder %s1000_s6, %s715_s19  ;;  %p720_p7 = scmp.lt.u32.totalorder %s1000_s6, %s1052_s3 }
 0x146   : > { %p721_p3 = scmp.lt.u32.totalorder %s719_s4, %s715_s19  ;;  %p723_p4 = scmp.lt.u32.totalorder %s715_s19, %s1000_s6 }
 0x147   : > { %p717_p1 = pnand %p716_p9, %p912_p10 }
 0x148   : > { %p722_p13 = por %p721_p3, %p720_p7 }
 0x149   : > { %p718_p2 = pneg %p717_p1 }
 0x14a   : > { %p724_p6 = por %p723_p4, %p722_p13 }
 0x14c   : > { %p725_p8 = pnand %p724_p6, %p718_p2 }
 0x14e   : > { %728 = shalt.err (!%p725_p8)
}
 0x14f   : > { %572 = dma.vmem_to_hbm [thread:$0]  (%p912_p10), %s1002_s11, 256, %s1000_s6, %s415_s26  }
 0x150 PF: > { %s443_s24 = sand.u32 1, %s767_s12   ;;  %p1072_p12 = scmp.ne.s32.totalorder %s1060_s23, 0 }
 0x151   : > { %p1073_p11 = scmp.ge.s32.totalorder %s787_s17, 2  ;;  %s444_s9 = scalar_lea.sflag [#allocation4], %s443_s24 }
 0x153   : > { %p583_p0 = pnand %p1073_p11, %p1072_p12 }
 0x155   : > { %762 = dma.done.wait (!%p583_p0), %s444_s9, 256  }
 0x156   : > { %764 = vsyncadd (!%p583_p0), %s444_s9, 4294967040  ;;  %s20_s17 = sadd.s32 1, %s787_s17   ;;  %s1074_s12 = smov %s771_s13 }
 0x157   : > { %p17_p5 = scmp.ge.s32.totalorder %s20_s17, 4   ;;  %s1075_s13 = smov %s775_s14 }
 0x158   : > { %s1076_s14 = smov %s921_s5  ;;  %s1077_s15 = smov %s783_s16 }
 0x159   : > { %s1078_s16 = smov %s1080_s28  ;;  %19 = sbr.rel (!%p17_p5) target bundleno = 7 (0x7), region = 81 }
 0x160   :  { %449 = vsyncpa [#allocation3], 1 }
 0x161   :  { %451 = vsyncpa [#allocation3 + $0x1], 1 }
 0x162   :  { %452 = vsyncpa [#allocation6], 1 }
 0x163   :  { %453 = vsyncpa [#allocation4], 1 }
 0x164   :  { %455 = vsyncpa [#allocation4 + $0x1], 1 }

</bundles_post_ra>
